<compile_context>
chip_gen: v6e
topology: v6e:2x2x1
jax: 0.10.0
libtpu: 0.0.40
codegen_flags: <defaults>
</compile_context>

<pallas_src>
import jax
import jax.numpy as jnp
from jax.experimental import pallas as pl
from jax.experimental.pallas import tpu as pltpu


def _pico_se_kernel(w_ref, shift_ref, feat_ref, out_ref):
    # w_ref     : (C_out, C_in)  per-image conv weight with BN scale + SE gate folded in
    # shift_ref : (C_out, 1)     folded BatchNorm shift
    # feat_ref  : (C_in,  TILE_HW)
    # out_ref   : (C_out, TILE_HW)
    y = jnp.dot(w_ref[...], feat_ref[...], preferred_element_type=jnp.float32)
    out_ref[...] = (y + shift_ref[...]).astype(out_ref.dtype)


def _choose_tile_hw(hw):
    """Largest lane-friendly tile (multiple of 128, <= 2048) that divides hw."""
    for t in (2048, 1024, 512, 256, 128):
        if hw % t == 0:
            return t
    return hw  # fall back to the full extent (always legal as a block dim)


def pico_se_forward(feat_nchw, avg_nchw, params, eps=1e-5):
    """feat_nchw: (N, C, H, W), avg_nchw: (N, C, 1, 1). Returns (N, C, H, W)."""
    N, C, H, W = feat_nchw.shape
    HW = H * W

    # NCHW-native: a pure reshape, no transpose / extra HBM pass.
    feat = feat_nchw.reshape(N, C, HW)

    # --- tiny per-image preprocessing in XLA (N*C and C*C sized tensors) ---
    fc_w = params["fc_w"].reshape(C, C)                      # (C_out, C_in)
    fc_b = params["fc_b"].reshape(C)
    avg = avg_nchw.reshape(N, C)
    gate = jax.nn.sigmoid(avg @ fc_w.T + fc_b)               # (N, C)  SE gate

    conv_w = params["conv_w"].reshape(C, C)                  # (C_out, C_in)
    bn_scale = params["bn_gamma"] * jax.lax.rsqrt(params["bn_var"] + eps)   # (C,)
    bn_shift = params["bn_beta"] - params["bn_mean"] * bn_scale             # (C,)

    # Fold BN scale (per out-channel) and SE gate (per in-channel, per image)
    # into one effective weight per image.
    w_eff = (conv_w * bn_scale[:, None])[None, :, :] * gate[:, None, :]     # (N, C, C)
    w_eff = w_eff.astype(feat.dtype)
    shift = bn_shift.reshape(C, 1).astype(jnp.float32)

    tile_hw = _choose_tile_hw(HW)
    grid = (N, HW // tile_hw)

    out = pl.pallas_call(
        _pico_se_kernel,
        out_shape=jax.ShapeDtypeStruct((N, C, HW), feat.dtype),
        grid_spec=pltpu.PrefetchScalarGridSpec(
            num_scalar_prefetch=0,
            grid=grid,
            in_specs=[
                # per-image effective weight (squeezed batch dim)
                pl.BlockSpec((None, C, C), lambda n, t: (n, 0, 0)),
                # BN shift: constant across the grid -> stays VMEM resident
                pl.BlockSpec((C, 1), lambda n, t: (0, 0)),
                # feature tile: (C, TILE_HW), HW on the lane axis
                pl.BlockSpec((None, C, tile_hw), lambda n, t: (n, 0, t)),
            ],
            out_specs=pl.BlockSpec((None, C, tile_hw), lambda n, t: (n, 0, t)),
        ),
        compiler_params=pltpu.CompilerParams(
            dimension_semantics=("parallel", "parallel")),
    )(w_eff, shift, feat)

    return out.reshape(N, C, H, W)


def _reference(feat_nchw, avg_nchw, params, eps=1e-5):
    """Pure-JAX reference matching the PyTorch module (BN in eval mode)."""
    N, C, H, W = feat_nchw.shape
    fc_w = params["fc_w"].reshape(C, C)
    gate = jax.nn.sigmoid(
        jnp.einsum("oc,ncij->noij", fc_w, avg_nchw)
        + params["fc_b"].reshape(1, C, 1, 1))
    x = feat_nchw * gate
    conv_w = params["conv_w"].reshape(C, C)
    y = jnp.einsum("oc,nchw->nohw", conv_w, x)
    scale = params["bn_gamma"] / jnp.sqrt(params["bn_var"] + eps)
    shift = params["bn_beta"] - params["bn_mean"] * scale
    return y * scale.reshape(1, C, 1, 1) + shift.reshape(1, C, 1, 1)


if __name__ == "__main__":
    key = jax.random.PRNGKey(0)
    N, C, H, W = 2, 16, 16, 16   # feat_channels = 16

    k = jax.random.split(key, 8)
    feat = jax.random.normal(k[0], (N, C, H, W), jnp.float32)
    avg_feat = jnp.mean(feat, axis=(2, 3), keepdims=True)  # (N, C, 1, 1)

    params = {
        "fc_w": jax.random.normal(k[1], (C, C, 1, 1), jnp.float32) * 0.1,
        "fc_b": jax.random.normal(k[2], (C,), jnp.float32) * 0.1,
        "conv_w": jax.random.normal(k[3], (C, C, 1, 1), jnp.float32) * 0.1,
        "bn_gamma": jnp.ones((C,), jnp.float32)
                    + 0.1 * jax.random.normal(k[4], (C,), jnp.float32),
        "bn_beta": 0.1 * jax.random.normal(k[5], (C,), jnp.float32),
        "bn_mean": 0.1 * jax.random.normal(k[6], (C,), jnp.float32),
        "bn_var": jnp.abs(jax.random.normal(k[7], (C,), jnp.float32)) + 0.5,
    }

    out = pico_se_forward(feat, avg_feat, params)
    out = jax.block_until_ready(out)

    ref = _reference(feat, avg_feat, params)
    assert out.shape == (N, C, H, W)
    assert jnp.allclose(out, ref, atol=1e-4, rtol=1e-4), "mismatch vs reference"

    print("KERNEL_OK")
</pallas_src>

<mosaic_0001>
module attributes {stable_mosaic.version = 11 : i64} {
  func.func @_pico_se_kernel(%arg0: i32, %arg1: i32, %arg2: memref<1x16x16xf32, #tpu.memory_space<vmem>>, %arg3: memref<16x1xf32, #tpu.memory_space<vmem>>, %arg4: memref<1x16x256xf32, #tpu.memory_space<vmem>>, %arg5: memref<1x16x256xf32, #tpu.memory_space<vmem>>) attributes {dimension_semantics = [#tpu.dimension_semantics<parallel>, #tpu.dimension_semantics<parallel>], iteration_bounds = array<i64: 2, 1>, scalar_prefetch = 0 : i64, scratch_operands = 0 : i64, tpu.core_type = #tpu.core_type<tc>, window_params = [{transform_indices = @transform_0, window_bounds = array<i64: 1, 16, 16>}, {pipeline_mode = #tpu.pipeline_mode<synchronous>, transform_indices = @transform_1, window_bounds = array<i64: 16, 1>}, {transform_indices = @transform_2, window_bounds = array<i64: 1, 16, 256>}, {transform_indices = @transform_3, window_bounds = array<i64: 1, 16, 256>}]} {
    %c0 = arith.constant 0 : index
    %c0_0 = arith.constant 0 : index
    %c0_1 = arith.constant 0 : index
    %0 = vector.load %arg2[%c0, %c0_0, %c0_1] : memref<1x16x16xf32, #tpu.memory_space<vmem>>, vector<1x16x16xf32>
    %1 = vector.shape_cast %0 : vector<1x16x16xf32> to vector<16x16xf32>
    %c0_2 = arith.constant 0 : index
    %c0_3 = arith.constant 0 : index
    %c0_4 = arith.constant 0 : index
    %2 = vector.load %arg4[%c0_2, %c0_3, %c0_4] : memref<1x16x256xf32, #tpu.memory_space<vmem>>, vector<1x16x256xf32>
    %3 = vector.shape_cast %2 : vector<1x16x256xf32> to vector<16x256xf32>
    %cst = arith.constant dense<0.000000e+00> : vector<16x256xf32>
    %4 = tpu.matmul %1, %3, %cst {dimension_numbers = #tpu.dot_dimension_numbers<[1], [0], [0], [1], [0, 0, 1, 1], [], []>} : vector<16x16xf32>, vector<16x256xf32>, vector<16x256xf32> -> vector<16x256xf32>
    %c0_5 = arith.constant 0 : index
    %c0_6 = arith.constant 0 : index
    %5 = vector.load %arg3[%c0_5, %c0_6] : memref<16x1xf32, #tpu.memory_space<vmem>>, vector<16x1xf32>
    %6 = vector.broadcast %5 : vector<16x1xf32> to vector<16x256xf32>
    %7 = arith.addf %4, %6 : vector<16x256xf32>
    %c0_7 = arith.constant 0 : index
    %c0_8 = arith.constant 0 : index
    %c0_9 = arith.constant 0 : index
    %8 = vector.load %arg5[%c0_7, %c0_8, %c0_9] : memref<1x16x256xf32, #tpu.memory_space<vmem>>, vector<1x16x256xf32>
    %9 = vector.shape_cast %8 : vector<1x16x256xf32> to vector<16x256xf32>
    %10 = vector.shape_cast %7 : vector<16x256xf32> to vector<1x16x256xf32>
    tpu.vector_store %arg5[%c0_7, %c0_8, %c0_9], %10 {strides = array<i32>} : memref<1x16x256xf32, #tpu.memory_space<vmem>>, vector<1x16x256xf32>,
    return
  }
  func.func @transform_0(%arg0: i32, %arg1: i32) -> (i32, i32, i32) {
    %c0_i32 = arith.constant 0 : i32
    %c0_i32_0 = arith.constant 0 : i32
    %c0_i32_1 = arith.constant 0 : i32
    return %arg0, %c0_i32, %c0_i32_0 : i32, i32, i32
  }
  func.func @transform_1(%arg0: i32, %arg1: i32) -> (i32, i32) {
    %c0_i32 = arith.constant 0 : i32
    %c0_i32_0 = arith.constant 0 : i32
    %c0_i32_1 = arith.constant 0 : i32
    return %c0_i32, %c0_i32_0 : i32, i32
  }
  func.func @transform_2(%arg0: i32, %arg1: i32) -> (i32, i32, i32) {
    %c0_i32 = arith.constant 0 : i32
    %c0_i32_0 = arith.constant 0 : i32
    return %arg0, %c0_i32, %arg1 : i32, i32, i32
  }
  func.func @transform_3(%arg0: i32, %arg1: i32) -> (i32, i32, i32) {
    %c0_i32 = arith.constant 0 : i32
    %c0_i32_0 = arith.constant 0 : i32
    return %arg0, %c0_i32, %arg1 : i32, i32, i32
  }
}

</mosaic_0001>

<bundles_post_ra>
// kernel: tpu_custom_call.1
= control target key start
LH: loop header
LB: loop body
LE: loop exit
PB: predicated region body
PF: predicated region fallthrough
CT: control target
= control target key end

     0   :  { %s944_s0 = inlined_call_operand.hbm [shape: f32[2,16,16], index: 0, kind: input, shape index: {}]   ;;  %s945_s1 = inlined_call_operand.vmem [shape: f32[16,1], index: 1, kind: input, shape index: {}]   ;;  %s946_s2 = inlined_call_operand.hbm [shape: f32[2,16,256], index: 2, kind: input, shape index: {}]   ;;  %s947_s3 = inlined_call_operand.hbm [shape: f32[2,16,256], index: 3, kind: output, shape index: {}]  }
   0x1   :  { %948 = sst [smem:[#allocation11_spill]] %s944_s0 }
   0x2   :  { %8 = vsyncpa [#allocation3], 0 }
   0x3   :  { %10 = vsyncpa [#allocation3 + $0x1], 0 }
   0x4   :  { %11 = vsyncpa [#allocation6], 0 }
   0x5   :  { %13 = vsyncpa [#allocation6 + $0x1], 0 }
   0x6   :  { %14 = vsyncpa [#allocation4], 0 }
   0x7   :  { %16 = vsyncpa [#allocation4 + $0x1], 0  ;;  %s758_s12 = smov 0   ;;  %s760_s13 = smov 0  }
   0x8   :  { %s762_s14 = smov 0   ;;  %s764_s15 = smov 0  }
   0x9   :  { %s766_s16 = smov 0   ;;  %s768_s17 = smov 0  }
   0xa LB: > { %s481_s18 = sadd.s32 4294967295, %s725_s17   ;;  %s482_s19 = sadd.s32 4294967294, %s725_s17   ;;  %s725_s17 = sphi %s768_s17, %s22_s17   ;;  %s721_s16 = sphi %s766_s16, %s960_s16   ;;  %s717_s15 = sphi %s764_s15, %s959_s15   ;;  %s713_s14 = sphi %s762_s14, %s958_s14   ;;  %s709_s13 = sphi %s760_s13, %s957_s13   ;;  %s705_s12 = sphi %s758_s12, %s956_s12  }
   0xb   : > { %s34_s20 = sadd.s32 1, %s721_s16  ;;  %s41_s21 = sadd.s32 1, %s713_s14 }
   0xc   : > { %p36_p0 = scmp.ge.s32.totalorder %s34_s20, 2  ;;  %p48_p1 = scmp.ne.s32.totalorder %s713_s14, %s709_s13 }
   0xd   : > { %p49_p2 = scmp.eq.s32.totalorder %s725_s17, 0  ;;  %p54_p3 = scmp.ne.s32.totalorder %s709_s13, %s705_s12 }
   0xe   : > { %s962_s20 = smov (%p36_p0, %s34_s20), 0  ;;  %p55_p5 = scmp.eq.s32.totalorder %s481_s18, 0 }
   0xf   : > { %p799_p4 = por %p49_p2, %p48_p1  ;;  %s38_s23 = ssub.s32 %s721_s16, %s962_s20 }
  0x10   : > { %p129_p6 = scmp.eq.s32.totalorder %s481_s18, 1  ;;  %p39_p7 = scmp.eq.s32.totalorder %s38_s23, 0 }
  0x11   : > { %p805_p8 = por %p55_p5, %p54_p3  ;;  %p135_p10 = scmp.eq.s32.totalorder %s482_s19, 1 }
  0x12   : > { %p809_p9 = por %p129_p6, %p48_p1  ;;  %p484_p12 = scmp.ge.s32.totalorder %s725_s17, 2 }
  0x13   : > { %s814_s26 = scalar_select %p39_p7, %s713_s14, %s41_s21  }
  0x14   : > { %p816_p11 = por %p135_p10, %p54_p3  ;;  %p526_p13 = scmp.lt.s32.totalorder %s725_s17, 2 }
  0x15   : > { %s823_s28 = sand.u32 1, %s713_s14   ;;  %s502_s30 = sshll.u32 %s721_s16, 8 }
  0x16   : > { %s485_s29 = sshll.u32 %s823_s28, 4  ;;  %s953_s0 = sld [smem:[#allocation11_spill]] }
  0x17   : > { %s162_s7 = scalar_lea.vmem [#allocation2], %s485_s29  ;;  %p832_p0 = pnand %p526_p13, %p799_p4 }
  0x18   : > { %s169_s8 = sshll.u32 %s162_s7, 4  ;;  %p491_p1 = scmp.ge.s32.totalorder %s725_s17, 1  ;;  %s170_s8 = int_to_ptr.vmem [resolvable:$true] %s169_s8 }
  0x19   : > { %s159_s10 = scalar_lea.sflag [#allocation3], %s823_s28  ;;  %p587_p2 = pneg %p832_p0 }
  0x1a   : > { %s598_s11 = scalar_lea.vmem %s170_s8, 256  ;;  %s727_s18 = smov [#allocation2]  }
  0x1b   : > { %p599_p3 = scmp.ne.s32.totalorder %s170_s8, %s598_s11  ;;  %s603_s19 = sshll.u32 %s727_s18, 4  ;;  %s604_s19 = int_to_ptr.vmem [resolvable:$false] %s603_s19 }
  0x1c   : > { %s168_s6 = scalar_lea.hbm %s953_s0, %s502_s30  ;;  %s605_s21 = scalar_lea.vmem %s604_s19, 512 }
  0x1d   : > { %p601_p5 = pnand %p599_p3, %p587_p2  ;;  %p606_p4 = scmp.lt.s32.totalorder %s170_s8, %s604_s19 }
  0x1e   : > { %p607_p7 = scmp.lt.s32.totalorder %s605_s21, %s598_s11 }
  0x1f   : > { %p602_p6 = pneg %p601_p5 }
  0x20   : > { %p608_p10 = por %p607_p7, %p606_p4 }
  0x22   : > { %p609_p13 = pnand %p608_p10, %p602_p6 }
  0x24   : > { %612 = shalt.err (!%p609_p13)
}
  0x25   : > { %s728_s22 = smov 128   ;;  %s729_s23 = smov 8  }
  0x26   : > { %518 = dma.hbm_to_vmem [thread:$0]  (!%p832_p0), %s168_s6, 256, %s170_s8, %s159_s10, %s728_s22, %s728_s22, %s729_s23  }
  0x27   : > { %p200_p3 = scmp.lt.s32.totalorder %s725_s17, 3  ;;  %s488_s29 = sshll.u32 %s823_s28, 5 }
  0x28   : > { %s503_s30 = sshll.u32 %s721_s16, 9  ;;  %s183_s18 = scalar_lea.vmem [#allocation5], %s488_s29 }
  0x29   : > { %p850_p5 = pnand %p491_p1, %p200_p3  ;;  %s191_s11 = scalar_lea.hbm %s946_s2, %s503_s30 }
  0x2a   : > { %s192_s19 = sshll.u32 %s183_s18, 4  ;;  %s180_s21 = scalar_lea.sflag [#allocation6], %s823_s28  ;;  %s193_s19 = int_to_ptr.vmem [resolvable:$true] %s192_s19 }
  0x2b   : > { %s626_s0 = scalar_lea.vmem %s193_s19, 512  ;;  %s730_s6 = smov [#allocation5]  }
  0x2c   : > { %p627_p6 = scmp.ne.s32.totalorder %s193_s19, %s626_s0  ;;  %s631_s8 = sshll.u32 %s730_s6, 4  ;;  %s632_s8 = int_to_ptr.vmem [resolvable:$false] %s631_s8 }
  0x2d   : > { %s633_s10 = scalar_lea.vmem %s632_s8, 1024  ;;  %p634_p1 = scmp.lt.s32.totalorder %s193_s19, %s632_s8 }
  0x2e   : > { %p629_p4 = pnand %p627_p6, %p587_p2  ;;  %p635_p10 = scmp.lt.s32.totalorder %s633_s10, %s626_s0 }
  0x30   : > { %p630_p7 = pneg %p629_p4  ;;  %p636_p13 = por %p635_p10, %p634_p1 }
  0x32   : > { %p637_p3 = pnand %p636_p13, %p630_p7 }
  0x34   : > { %640 = shalt.err (!%p637_p3)
}
  0x35   : > { %s731_s22 = smov 256   ;;  %s732_s23 = smov 16  }
  0x36   : > { %521 = dma.hbm_to_vmem [thread:$0]  (!%p832_p0), %s191_s11, 512, %s193_s19, %s180_s21, %s731_s22, %s731_s22, %s732_s23  }
  0x37   : > { %204 = sbr.rel (%p850_p5) target bundleno = 282 (0x11a), region = 32  ;;  %s866_s28 = sand.u32 (!%p850_p5), 1, %s709_s13  }
  0x38   : > { %s492_s29 = sshll.u32 (!%p850_p5), %s866_s28, 4  ;;  %s207_s30 = scalar_lea.sflag (!%p850_p5), [#allocation3], %s866_s28 }
  0x39   : > { %s210_s0 = scalar_lea.vmem (!%p850_p5), [#allocation2], %s492_s29 }
  0x3c   : > { %692 = dma.done.wait (%p805_p8), %s207_s30, 256  }
  0x3d   : > { %694 = vsyncadd (%p805_p8), %s207_s30, 4294967040  ;;  %s493_s9 = sshll.u32 %s866_s28, 5  ;;  %s216_s4 = scalar_lea.sflag [#allocation6], %s866_s28 }
  0x3e   : > { %s219_s5 = scalar_lea.vmem [#allocation5], %s493_s9 }
  0x3f   : > { %696 = dma.done.wait (%p805_p8), %s216_s4, 512  }
  0x40   : > { %698 = vsyncadd (%p805_p8), %s216_s4, 4294966784  ;;  %v733_v0 = vmov 0.0   ;;  %v734_v1 = vmov 0   ;;  %v254_v2 = vld [vmem:[%s219_s5 + $0x18] sm:$0xff]  ;;  %v253_v3 = vld [vmem:[%s219_s5 + $0x10] sm:$0xff]  ;;  %vm267_vm0 = vcmask 130048  }
  0x41   : > { %338 = vmatprep.mubr.f32.mxu0 %v733_v0  ;;  %344 = vmatprep.mubr.f32.mxu1 %v733_v0  ;;  %v252_v4 = vld [vmem:[%s219_s5 + $0x8] sm:$0xff]  ;;  %v251_v5 = vld [vmem:[%s219_s5] sm:$0xff]  ;;  %s246_s19 = scalar_lea.vmem [#allocation7], %s493_s9  ;;  %s504_s6 = sshll.u32 %s717_s15, 9 }
  0x42   : > { %584 = vset.pattern.permute.xlu0 %v734_v1  ;;  %302 = vmatprep.subr.mxu0 %v254_v2  ;;  %v249_v6 = vld [vmem:[%s210_s0] sm:$0xff]  ;;  %v250_v7 = vld [vmem:[%s210_s0 + $0x8] sm:$0xff]  ;;  %s371_s21 = sshll.u32 %s246_s19, 4  ;;  %s896_s22 = scalar_lea.hbm %s947_s3, %s504_s6  ;;  %s891_s21 = int_to_ptr.vmem [resolvable:$true] %s371_s21 }
  0x43   : > { %505 = vmatprep.subr.mxu1 %v254_v2  ;;  %303 = vmatpush1.msra.mxu0 %v253_v3  ;;  %v255_v8 = vld [vmem:[%s945_s1] sm:$0xff]  ;;  %v256_v9 = vld [vmem:[%s945_s1 + $0x8] sm:$0xff]  ;;  %s356_s15 = scalar_lea.sflag [#allocation4], %s866_s28  ;;  %s641_s23 = scalar_lea.vmem %s891_s21, 512 }
  0x44   : > { %507 = vmatpush1.msra.mxu1 %v253_v3  ;;  %304 = vmatprep.subr.mxu0 %v252_v4  ;;  %p642_p8 = scmp.ne.s32.totalorder %s891_s21, %s641_s23  ;;  %s735_s29 = smov [#allocation7]  }
  0x45   : > { %506 = vmatprep.subr.mxu1 %v252_v4  ;;  %305 = vmatpush1.msra.mxu0 %v251_v5  ;;  %s645_s30 = sshll.u32 %s735_s29, 4  ;;  %s646_s30 = int_to_ptr.vmem [resolvable:$false] %s645_s30 }
  0x46   : > { %508 = vmatpush1.msra.mxu1 %v251_v5  ;;  %495 = vmatmul.mubr.msk.f32.vlgmr.msra.gmra.mxu0 %vm267_vm0, %v249_v6  ;;  %p643_p0 = pnand %p642_p8, %p809_p9  ;;  %s647_s0 = scalar_lea.vmem %s646_s30, 1024 }
  0x47   : > { %496 = vmatmul.mubr.msk.f32.vlgmr.msra.gmra.mxu1 %vm267_vm0, %v250_v7  ;;  %259 = vperm.xlu0 %584, %v255_v8   ;;  %p648_p5 = scmp.lt.s32.totalorder %s891_s21, %s646_s30  ;;  %p649_p6 = scmp.lt.s32.totalorder %s647_s0, %s641_s23 }
  0x48   : > { %p644_p2 = pneg %p643_p0 }
  0x49   : > { %p650_p4 = por %p649_p6, %p648_p5 }
  0x4b   : > { %264 = vperm.xlu0 %584, %v256_v9   ;;  %p651_p7 = pnand %p650_p4, %p644_p2 }
  0xc2   : > { %v260_v10 = vpop.permute.xlu0 %259 }
  0xc6   : > { %v265_v11 = vpop.permute.xlu0 %264 }
 0x106   : > { %v340_v12 = vpop.f32.mrf.mxu0 }
 0x107   : > { %v346_v13 = vpop.f32.mrf.mxu1  ;;  %v341_v14 = vadd.f32 %v340_v12, %v260_v10 }
 0x108   : > { %v347_v15 = vadd.f32 %v346_v13, %v265_v11  ;;  %v342_v16 = vpop.f32.mrf.mxu0 }
 0x109   : > { %v348_v17 = vpop.f32.mrf.mxu1  ;;  %351 = vst [vmem:[%s246_s19] sm:$0xff] %v341_v14  ;;  %v343_v18 = vadd.f32 %v342_v16, %v260_v10 }
 0x10a   : > { %353 = vst [vmem:[%s246_s19 + $0x10] sm:$0xff] %v347_v15  ;;  %v349_v19 = vadd.f32 %v348_v17, %v265_v11 }
 0x10b   : > { %352 = vst [vmem:[%s246_s19 + $0x8] sm:$0xff] %v343_v18 }
 0x10c   : > { %354 = vst [vmem:[%s246_s19 + $0x18] sm:$0xff] %v349_v19 }
 0x10d   : > { %654 = shalt.err (!%p651_p7)
}
 0x10e   : > { %s655_s9 = scalar_lea.hbm %s896_s22, 512  ;;  %s659_s24 = scalar_lea.hbm %s947_s3, 1024 }
 0x10f   : > { %p656_p1 = scmp.ne.s32.totalorder %s896_s22, %s655_s9  ;;  %p660_p3 = scmp.lt.s32.totalorder %s896_s22, %s947_s3 }
 0x110   : > { %p661_p8 = scmp.lt.s32.totalorder %s659_s24, %s655_s9 }
 0x111   : > { %p657_p10 = pnand %p656_p1, %p809_p9 }
 0x112   : > { %p662_p0 = por %p661_p8, %p660_p3 }
 0x113   : > { %p658_p13 = pneg %p657_p10 }
 0x115   : > { %p663_p2 = pnand %p662_p0, %p658_p13 }
 0x117   : > { %666 = shalt.err (!%p663_p2)
}
 0x118   : > { %s736_s18 = smov 256   ;;  %s737_s19 = smov 16  }
 0x119   : > { %513 = dma.vmem_to_hbm [thread:$0]  (%p809_p9), %s891_s21, 512, %s896_s22, %s356_s15, %s736_s18, %s736_s18, %s737_s19  }
 0x11a PF: > { %s386_s6 = sand.u32 1, %s705_s12   ;;  %p523_p5 = pnand %p484_p12, %p816_p11 }
 0x11b   : > { %s387_s8 = scalar_lea.sflag [#allocation4], %s386_s6 }
 0x11c   : > { %p524_p6 = pneg %p523_p5 }
 0x11e   : > { %700 = dma.done.wait (%p524_p6), %s387_s8, 512  }
 0x11f   : > { %702 = vsyncadd (%p524_p6), %s387_s8, 4294966784  ;;  %s22_s17 = sadd.s32 1, %s725_s17   ;;  %s956_s12 = smov %s709_s13 }
 0x120   : > { %p19_p4 = scmp.ge.s32.totalorder %s22_s17, 4   ;;  %s957_s13 = smov %s713_s14 }
 0x121   : > { %s958_s14 = smov %s814_s26  ;;  %s959_s15 = smov %s721_s16 }
 0x122   : > { %s960_s16 = smov %s962_s20  ;;  %21 = sbr.rel (!%p19_p4) target bundleno = 10 (0xa), region = 90 }
 0x127   :  { %392 = vsyncpa [#allocation3], 1 }
 0x128   :  { %394 = vsyncpa [#allocation3 + $0x1], 1 }
 0x129   :  { %395 = vsyncpa [#allocation6], 1 }
 0x12a   :  { %397 = vsyncpa [#allocation6 + $0x1], 1 }
 0x12b   :  { %398 = vsyncpa [#allocation4], 1 }
 0x12c   :  { %400 = vsyncpa [#allocation4 + $0x1], 1 }

</bundles_post_ra>
